<compile_context>
chip_gen: v6e
topology: v6e:2x2x1
jax: 0.10.0
libtpu: 0.0.40
codegen_flags: <defaults>
</compile_context>

<pallas_src>
import jax
import jax.numpy as jnp
import numpy as np
from jax.experimental import pallas as pl
from jax.experimental.pallas import tpu as pltpu


def _pick_hw_tile(HW, bytes_per_col, budget_bytes=24 << 20, max_tile=4096):
    """Largest multiple-of-128 divisor of HW whose double-buffered block
    footprint fits the VMEM budget (safe on v7x's 64 MiB)."""
    cap = (budget_bytes // max(bytes_per_col, 1)) // 128 * 128
    cap = min(max_tile, max(128, cap))
    best = None
    t = 128
    while t <= min(HW, cap):
        if HW % t == 0:
            best = t
        t += 128
    if best is not None:
        return best
    if HW <= cap:          # small, non-128-divisible images: one block
        return HW
    for d in range(cap, 0, -1):   # last resort: largest divisor that fits
        if HW % d == 0:
            return d
    return HW


# -----------------------------------------------------------------------------
# Fused kernel: inner BNN head for all S samples + test_combined math.
# Per grid step (batch n, HW-tile t):
#   logits[2*S*C, T] = W[2*S*C, Cin] @ X[Cin, T] + b        (one MXU pass)
#   rows [0:S*C]   = mean-head logits of samples 0..S-1
#   rows [S*C:2SC] = log-variance logits of samples 0..S-1
#   mean  = mean_s(mean_s_logits)
#   a_sd  = sqrt(mean_s(exp(var_logits)))
#   e_var = unbiased var_s(mean_s_logits)                    (torch.var ddof=1)
#   H(t)  = -mean_C(logsoftmax(t) * softmax(t))
#   a_var = |H(mean + a_sd) - H(mean - a_sd)| / 0.2071
#   e_var = |H(mean + e_var) - H(mean - e_var)| / 0.2071
# -----------------------------------------------------------------------------
def _fused_combined_kernel(x_ref, w_ref, b_ref,
                           mean_ref, e_var_ref, a_var_ref,
                           exp_var_ref, samp_ref):
    C = mean_ref.shape[0]
    SC = exp_var_ref.shape[0]          # S * C
    S = SC // C
    n_keep = samp_ref.shape[0] // C    # number of retained mean samples (3)

    x = x_ref[...]                     # [Cin, T]      bf16, pixels on lanes
    w = w_ref[...]                     # [2*S*C, Cin]  bf16 (resident weights)
    b = b_ref[...]                     # [2*S*C, 1]    f32

    # Single MXU pass for all samples and both heads, f32 accumulation.
    logits = jnp.dot(w, x, preferred_element_type=jnp.float32) + b   # [2SC, T]

    m_logits = logits[:SC]             # [S*C, T] mean-head logits
    v_logits = logits[SC:]             # [S*C, T] log-variance logits

    exp_v = jnp.exp(v_logits)          # torch.exp(var_i) for every sample
    exp_var_ref[...] = exp_v
    samp_ref[...] = m_logits[:n_keep * C]          # sample_0..2

    # Reductions over the S axis via static sublane slices (S, C are static).
    mean_acc = m_logits[0:C]
    a_acc = exp_v[0:C]
    for s in range(1, S):
        mean_acc = mean_acc + m_logits[s * C:(s + 1) * C]
        a_acc = a_acc + exp_v[s * C:(s + 1) * C]
    mean = mean_acc * (1.0 / S)                    # [C, T]
    a_sd = jnp.sqrt(a_acc * (1.0 / S))             # [C, T]

    var_acc = jnp.zeros_like(mean)
    for s in range(S):
        d = m_logits[s * C:(s + 1) * C] - mean
        var_acc = var_acc + d * d
    e_var = var_acc * (1.0 / (S - 1))              # unbiased variance

    def entropy(t):                    # t: [C, T], classes on the sublane axis
        mx = jnp.max(t, axis=0, keepdims=True)
        z = t - mx
        e = jnp.exp(z)
        ssum = jnp.sum(e, axis=0, keepdims=True)
        # H = -mean_C(p * log p) = (log(ssum) - sum(e*z)/ssum) / C
        # Exact divide: the approx-reciprocal path exceeded tolerance.
        return (jnp.log(ssum)
                - jnp.sum(e * z, axis=0, keepdims=True) / ssum) * (1.0 / C)

    inv_scale = 1.0 / 0.2071
    a_var_ref[...] = jnp.abs(entropy(mean + a_sd)
                             - entropy(mean - a_sd)) * inv_scale
    e_var_ref[...] = jnp.abs(entropy(mean + e_var)
                             - entropy(mean - e_var)) * inv_scale
    mean_ref[...] = mean


def run_fused(x3_bf16, w_cat_bf16, b_cat_f32, S, C, hw_tile, n_keep):
    N, Cin, HW = x3_bf16.shape
    SC2 = w_cat_bf16.shape[0]          # 2*S*C
    SC = S * C
    n_hw = HW // hw_tile
    out_shape = (
        jax.ShapeDtypeStruct((N, C, HW), jnp.float32),           # mean
        jax.ShapeDtypeStruct((N, 1, HW), jnp.float32),           # e_var gap
        jax.ShapeDtypeStruct((N, 1, HW), jnp.float32),           # a_var gap
        jax.ShapeDtypeStruct((N, SC, HW), jnp.float32),          # exp(var) samples
        jax.ShapeDtypeStruct((N, n_keep * C, HW), jnp.float32),  # sample_0..2
    )
    return pl.pallas_call(
        _fused_combined_kernel,
        out_shape=out_shape,
        grid_spec=pltpu.PrefetchScalarGridSpec(
            num_scalar_prefetch=0,
            grid=(N, n_hw),
            in_specs=[
                pl.BlockSpec((None, Cin, hw_tile), lambda n, t: (n, 0, t)),
                pl.BlockSpec((SC2, Cin), lambda n, t: (0, 0)),    # resident
                pl.BlockSpec((SC2, 1), lambda n, t: (0, 0)),      # resident
            ],
            out_specs=[
                pl.BlockSpec((None, C, hw_tile), lambda n, t: (n, 0, t)),
                pl.BlockSpec((None, 1, hw_tile), lambda n, t: (n, 0, t)),
                pl.BlockSpec((None, 1, hw_tile), lambda n, t: (n, 0, t)),
                pl.BlockSpec((None, SC, hw_tile), lambda n, t: (n, 0, t)),
                pl.BlockSpec((None, n_keep * C, hw_tile),
                             lambda n, t: (n, 0, t)),
            ],
        ),
        compiler_params=pltpu.CompilerParams(
            dimension_semantics=("parallel", "parallel"),
            vmem_limit_bytes=32 * 1024 * 1024),
    )(x3_bf16, w_cat_bf16, b_cat_f32)


# -----------------------------------------------------------------------------
# Wrapper == Model.forward in eval mode (uncertainty == 'combined'):
# Model.test_combined(input), returning the same results dict.
# -----------------------------------------------------------------------------
def model_forward_test_combined(x_nchw, params):
    N, Cin, H, W = x_nchw.shape
    S, _, C = params["w_mean"].shape
    assert S >= 3, "test_combined exposes sample_0..2 and uses ddof=1 variance"
    HW = H * W
    n_keep = 3

    # One-time tiny weight re-layout: per-sample mean/var heads stacked as
    # [2*S*C, Cin] (bf16 for MXU throughput; accumulation stays f32).
    w_mean = jnp.transpose(params["w_mean"], (0, 2, 1)).reshape(S * C, Cin)
    w_var = jnp.transpose(params["w_var"], (0, 2, 1)).reshape(S * C, Cin)
    w_cat = jnp.concatenate([w_mean, w_var], axis=0).astype(jnp.bfloat16)
    b_mean = jnp.transpose(params["b_mean"], (0, 2, 1)).reshape(S * C, 1)
    b_var = jnp.transpose(params["b_var"], (0, 2, 1)).reshape(S * C, 1)
    b_cat = jnp.concatenate([b_mean, b_var], axis=0).astype(jnp.float32)

    x3 = x_nchw.reshape(N, Cin, HW).astype(jnp.bfloat16)  # NCHW is C-major

    # Double-buffered per-lane-column footprint of all blocks (inputs+outputs).
    bytes_per_col = 2 * (Cin * 2 + C * 4 + 4 + 4 + S * C * 4 + n_keep * C * 4)
    hw_tile = _pick_hw_tile(HW, bytes_per_col)

    mean, e_var, a_var, exp_var, samples = run_fused(
        x3, w_cat, b_cat, S, C, hw_tile, n_keep)

    # TODO(synk): the real inner network (model.<uncertainty>.make_model) is a
    # full encoder/decoder loaded dynamically from config; represented here by
    # a synthetic per-pixel Bayesian linear head with the same output contract.
    return {
        "mean": mean.reshape(N, C, H, W),
        "e_var": e_var.reshape(N, H, W),
        "a_var": a_var.reshape(N, H, W),
        "var_a_samples": [exp_var[:, i * C:(i + 1) * C].reshape(N, C, H, W)
                          for i in range(S)],
        "sample_0": samples[:, 0 * C:1 * C].reshape(N, C, H, W),
        "sample_1": samples[:, 1 * C:2 * C].reshape(N, C, H, W),
        "sample_2": samples[:, 2 * C:3 * C].reshape(N, C, H, W),
    }


# -----------------------------------------------------------------------------
# Pure-JAX reference of test_combined (for the correctness check).
# -----------------------------------------------------------------------------
def _reference(mean_samples, var_samples):
    # mean_samples / var_samples: [S, N, C, F]
    mean = jnp.mean(mean_samples, axis=0)
    a_sd = jnp.sqrt(jnp.mean(jnp.exp(var_samples), axis=0))
    e_var = jnp.var(mean_samples, axis=0, ddof=1)

    def entropy(t):
        logp = jax.nn.log_softmax(t, axis=1)
        return -jnp.mean(logp * jnp.exp(logp), axis=1)

    a_gap = jnp.abs(entropy(mean + a_sd) - entropy(mean - a_sd)) / 0.2071
    e_gap = jnp.abs(entropy(mean + e_var) - entropy(mean - e_var)) / 0.2071
    return mean, e_gap, a_gap


if __name__ == "__main__":
    # batch=2, Cin=4, spatial 16x16, classes=4, S=4 MC samples (S>=3 needed).
    N, Cin, H, W, C, S = 2, 4, 16, 16, 4, 4

    key = jax.random.PRNGKey(0)
    kx, kwm, kbm, kwv, kbv = jax.random.split(key, 5)

    x = jax.random.normal(kx, (N, Cin, H, W), dtype=jnp.float32)

    # Deterministic per-sample weights (synthetic Bayesian weight samples).
    params = {
        "w_mean": 0.5 * jax.random.normal(kwm, (S, Cin, C), jnp.float32),
        "b_mean": 0.1 * jax.random.normal(kbm, (S, 1, C), jnp.float32),
        "w_var": 0.2 * jax.random.normal(kwv, (S, Cin, C), jnp.float32),
        "b_var": 0.1 * jax.random.normal(kbv, (S, 1, C), jnp.float32),
    }

    results = model_forward_test_combined(x, params)
    jax.block_until_ready(results["mean"])
    jax.block_until_ready(results["e_var"])
    jax.block_until_ready(results["a_var"])
    jax.block_until_ready(results["var_a_samples"][0])

    # Pure-JAX reference with the SAME bf16 operands / f32 accumulation.
    F = H * W
    x3_bf = x.reshape(N, Cin, F).astype(jnp.bfloat16)
    wm_bf = params["w_mean"].astype(jnp.bfloat16)
    wv_bf = params["w_var"].astype(jnp.bfloat16)
    bm = jnp.transpose(params["b_mean"], (0, 2, 1))[:, None, :, :]
    bv = jnp.transpose(params["b_var"], (0, 2, 1))[:, None, :, :]
    ml = jnp.einsum("nif,sic->sncf", x3_bf, wm_bf,
                    preferred_element_type=jnp.float32) + bm
    vl = jnp.einsum("nif,sic->sncf", x3_bf, wv_bf,
                    preferred_element_type=jnp.float32) + bv
    ref_mean, ref_e, ref_a = _reference(ml, vl)

    np.testing.assert_allclose(np.asarray(results["mean"]).reshape(N, C, F),
                               np.asarray(ref_mean), rtol=1e-3, atol=1e-3)
    np.testing.assert_allclose(np.asarray(results["e_var"]).reshape(N, F),
                               np.asarray(ref_e), rtol=5e-3, atol=2e-3)
    np.testing.assert_allclose(np.asarray(results["a_var"]).reshape(N, F),
                               np.asarray(ref_a), rtol=5e-3, atol=2e-3)
    np.testing.assert_allclose(np.asarray(results["sample_0"]).reshape(N, C, F),
                               np.asarray(ml[0]), rtol=1e-3, atol=1e-3)
    np.testing.assert_allclose(
        np.asarray(results["var_a_samples"][0]).reshape(N, C, F),
        np.asarray(jnp.exp(vl[0])), rtol=1e-3, atol=1e-3)

    print("KERNEL_OK")
</pallas_src>

<mosaic_0001>
module attributes {stable_mosaic.version = 11 : i64} {
  func.func @_fused_combined_kernel(%arg0: i32, %arg1: i32, %arg2: memref<1x4x256xbf16, #tpu.memory_space<vmem>>, %arg3: memref<32x4xbf16, #tpu.memory_space<vmem>>, %arg4: memref<32x1xf32, #tpu.memory_space<vmem>>, %arg5: memref<1x4x256xf32, #tpu.memory_space<vmem>>, %arg6: memref<1x1x256xf32, #tpu.memory_space<vmem>>, %arg7: memref<1x1x256xf32, #tpu.memory_space<vmem>>, %arg8: memref<1x16x256xf32, #tpu.memory_space<vmem>>, %arg9: memref<1x12x256xf32, #tpu.memory_space<vmem>>) attributes {dimension_semantics = [#tpu.dimension_semantics<parallel>, #tpu.dimension_semantics<parallel>], iteration_bounds = array<i64: 2, 1>, scalar_prefetch = 0 : i64, scratch_operands = 0 : i64, tpu.core_type = #tpu.core_type<tc>, window_params = [{transform_indices = @transform_0, window_bounds = array<i64: 1, 4, 256>}, {pipeline_mode = #tpu.pipeline_mode<synchronous>, transform_indices = @transform_1, window_bounds = array<i64: 32, 4>}, {pipeline_mode = #tpu.pipeline_mode<synchronous>, transform_indices = @transform_2, window_bounds = array<i64: 32, 1>}, {transform_indices = @transform_3, window_bounds = array<i64: 1, 4, 256>}, {transform_indices = @transform_4, window_bounds = array<i64: 1, 1, 256>}, {transform_indices = @transform_5, window_bounds = array<i64: 1, 1, 256>}, {transform_indices = @transform_6, window_bounds = array<i64: 1, 16, 256>}, {transform_indices = @transform_7, window_bounds = array<i64: 1, 12, 256>}]} {
    %c0 = arith.constant 0 : index
    %c0_0 = arith.constant 0 : index
    %c0_1 = arith.constant 0 : index
    %0 = vector.load %arg2[%c0, %c0_0, %c0_1] : memref<1x4x256xbf16, #tpu.memory_space<vmem>>, vector<1x4x256xbf16>
    %1 = vector.shape_cast %0 : vector<1x4x256xbf16> to vector<4x256xbf16>
    %c0_2 = arith.constant 0 : index
    %c0_3 = arith.constant 0 : index
    %2 = vector.load %arg3[%c0_2, %c0_3] : memref<32x4xbf16, #tpu.memory_space<vmem>>, vector<32x4xbf16>
    %c0_4 = arith.constant 0 : index
    %c0_5 = arith.constant 0 : index
    %3 = vector.load %arg4[%c0_4, %c0_5] : memref<32x1xf32, #tpu.memory_space<vmem>>, vector<32x1xf32>
    %cst = arith.constant dense<0.000000e+00> : vector<32x256xf32>
    %4 = tpu.matmul %2, %1, %cst {dimension_numbers = #tpu.dot_dimension_numbers<[1], [0], [0], [1], [0, 0, 1, 1], [], []>} : vector<32x4xbf16>, vector<4x256xbf16>, vector<32x256xf32> -> vector<32x256xf32>
    %5 = vector.broadcast %3 : vector<32x1xf32> to vector<32x256xf32>
    %6 = arith.addf %4, %5 : vector<32x256xf32>
    %7 = vector.extract_strided_slice %6 {offsets = [0, 0], sizes = [16, 256], strides = [1, 1]} : vector<32x256xf32> to vector<16x256xf32>
    %8 = vector.extract_strided_slice %6 {offsets = [16, 0], sizes = [16, 256], strides = [1, 1]} : vector<32x256xf32> to vector<16x256xf32>
    %9 = math.exp %8 : vector<16x256xf32>
    %c0_6 = arith.constant 0 : index
    %c0_7 = arith.constant 0 : index
    %c0_8 = arith.constant 0 : index
    %10 = vector.load %arg8[%c0_6, %c0_7, %c0_8] : memref<1x16x256xf32, #tpu.memory_space<vmem>>, vector<1x16x256xf32>
    %11 = vector.shape_cast %10 : vector<1x16x256xf32> to vector<16x256xf32>
    %12 = vector.shape_cast %9 : vector<16x256xf32> to vector<1x16x256xf32>
    tpu.vector_store %arg8[%c0_6, %c0_7, %c0_8], %12 {strides = array<i32>} : memref<1x16x256xf32, #tpu.memory_space<vmem>>, vector<1x16x256xf32>,
    %13 = vector.extract_strided_slice %7 {offsets = [0, 0], sizes = [12, 256], strides = [1, 1]} : vector<16x256xf32> to vector<12x256xf32>
    %c0_9 = arith.constant 0 : index
    %c0_10 = arith.constant 0 : index
    %c0_11 = arith.constant 0 : index
    %14 = vector.load %arg9[%c0_9, %c0_10, %c0_11] : memref<1x12x256xf32, #tpu.memory_space<vmem>>, vector<1x12x256xf32>
    %15 = vector.shape_cast %14 : vector<1x12x256xf32> to vector<12x256xf32>
    %16 = vector.shape_cast %13 : vector<12x256xf32> to vector<1x12x256xf32>
    tpu.vector_store %arg9[%c0_9, %c0_10, %c0_11], %16 {strides = array<i32>} : memref<1x12x256xf32, #tpu.memory_space<vmem>>, vector<1x12x256xf32>,
    %17 = vector.extract_strided_slice %7 {offsets = [0, 0], sizes = [4, 256], strides = [1, 1]} : vector<16x256xf32> to vector<4x256xf32>
    %18 = vector.extract_strided_slice %9 {offsets = [0, 0], sizes = [4, 256], strides = [1, 1]} : vector<16x256xf32> to vector<4x256xf32>
    %19 = vector.extract_strided_slice %7 {offsets = [4, 0], sizes = [4, 256], strides = [1, 1]} : vector<16x256xf32> to vector<4x256xf32>
    %20 = arith.addf %17, %19 : vector<4x256xf32>
    %21 = vector.extract_strided_slice %9 {offsets = [4, 0], sizes = [4, 256], strides = [1, 1]} : vector<16x256xf32> to vector<4x256xf32>
    %22 = arith.addf %18, %21 : vector<4x256xf32>
    %23 = vector.extract_strided_slice %7 {offsets = [8, 0], sizes = [4, 256], strides = [1, 1]} : vector<16x256xf32> to vector<4x256xf32>
    %24 = arith.addf %20, %23 : vector<4x256xf32>
    %25 = vector.extract_strided_slice %9 {offsets = [8, 0], sizes = [4, 256], strides = [1, 1]} : vector<16x256xf32> to vector<4x256xf32>
    %26 = arith.addf %22, %25 : vector<4x256xf32>
    %27 = vector.extract_strided_slice %7 {offsets = [12, 0], sizes = [4, 256], strides = [1, 1]} : vector<16x256xf32> to vector<4x256xf32>
    %28 = arith.addf %24, %27 : vector<4x256xf32>
    %29 = vector.extract_strided_slice %9 {offsets = [12, 0], sizes = [4, 256], strides = [1, 1]} : vector<16x256xf32> to vector<4x256xf32>
    %30 = arith.addf %26, %29 : vector<4x256xf32>
    %cst_12 = arith.constant 2.500000e-01 : f32
    %31 = vector.broadcast %cst_12 : f32 to vector<4x256xf32>
    %32 = arith.mulf %28, %31 : vector<4x256xf32>
    %cst_13 = arith.constant 2.500000e-01 : f32
    %33 = vector.broadcast %cst_13 : f32 to vector<4x256xf32>
    %34 = arith.mulf %30, %33 : vector<4x256xf32>
    %35 = math.sqrt %34 : vector<4x256xf32>
    %cst_14 = arith.constant 0.000000e+00 : f32
    %36 = vector.broadcast %cst_14 : f32 to vector<4x256xf32>
    %37 = vector.extract_strided_slice %7 {offsets = [0, 0], sizes = [4, 256], strides = [1, 1]} : vector<16x256xf32> to vector<4x256xf32>
    %38 = arith.subf %37, %32 : vector<4x256xf32>
    %39 = arith.mulf %38, %38 : vector<4x256xf32>
    %40 = arith.addf %36, %39 : vector<4x256xf32>
    %41 = vector.extract_strided_slice %7 {offsets = [4, 0], sizes = [4, 256], strides = [1, 1]} : vector<16x256xf32> to vector<4x256xf32>
    %42 = arith.subf %41, %32 : vector<4x256xf32>
    %43 = arith.mulf %42, %42 : vector<4x256xf32>
    %44 = arith.addf %40, %43 : vector<4x256xf32>
    %45 = vector.extract_strided_slice %7 {offsets = [8, 0], sizes = [4, 256], strides = [1, 1]} : vector<16x256xf32> to vector<4x256xf32>
    %46 = arith.subf %45, %32 : vector<4x256xf32>
    %47 = arith.mulf %46, %46 : vector<4x256xf32>
    %48 = arith.addf %44, %47 : vector<4x256xf32>
    %49 = vector.extract_strided_slice %7 {offsets = [12, 0], sizes = [4, 256], strides = [1, 1]} : vector<16x256xf32> to vector<4x256xf32>
    %50 = arith.subf %49, %32 : vector<4x256xf32>
    %51 = arith.mulf %50, %50 : vector<4x256xf32>
    %52 = arith.addf %48, %51 : vector<4x256xf32>
    %cst_15 = arith.constant 0.333333343 : f32
    %53 = vector.broadcast %cst_15 : f32 to vector<4x256xf32>
    %54 = arith.mulf %52, %53 : vector<4x256xf32>
    %55 = arith.addf %32, %35 : vector<4x256xf32>
    %cst_16 = arith.constant dense<0xFF800000> : vector<256xf32>
    %56 = vector.multi_reduction <maximumf>, %55, %cst_16 [0] : vector<4x256xf32> to vector<256xf32>
    %57 = vector.shape_cast %56 : vector<256xf32> to vector<1x256xf32>
    %58 = vector.broadcast %57 : vector<1x256xf32> to vector<4x256xf32>
    %59 = arith.subf %55, %58 : vector<4x256xf32>
    %60 = math.exp %59 : vector<4x256xf32>
    %cst_17 = arith.constant dense<0.000000e+00> : vector<256xf32>
    %61 = vector.multi_reduction <add>, %60, %cst_17 [0] : vector<4x256xf32> to vector<256xf32>
    %62 = vector.shape_cast %61 : vector<256xf32> to vector<1x256xf32>
    %63 = math.log %62 : vector<1x256xf32>
    %64 = arith.mulf %60, %59 : vector<4x256xf32>
    %cst_18 = arith.constant dense<0.000000e+00> : vector<256xf32>
    %65 = vector.multi_reduction <add>, %64, %cst_18 [0] : vector<4x256xf32> to vector<256xf32>
    %66 = vector.shape_cast %65 : vector<256xf32> to vector<1x256xf32>
    %67 = arith.divf %66, %62 : vector<1x256xf32>
    %68 = arith.subf %63, %67 : vector<1x256xf32>
    %cst_19 = arith.constant 2.500000e-01 : f32
    %69 = vector.broadcast %cst_19 : f32 to vector<1x256xf32>
    %70 = arith.mulf %68, %69 : vector<1x256xf32>
    %71 = arith.subf %32, %35 : vector<4x256xf32>
    %cst_20 = arith.constant dense<0xFF800000> : vector<256xf32>
    %72 = vector.multi_reduction <maximumf>, %71, %cst_20 [0] : vector<4x256xf32> to vector<256xf32>
    %73 = vector.shape_cast %72 : vector<256xf32> to vector<1x256xf32>
    %74 = vector.broadcast %73 : vector<1x256xf32> to vector<4x256xf32>
    %75 = arith.subf %71, %74 : vector<4x256xf32>
    %76 = math.exp %75 : vector<4x256xf32>
    %cst_21 = arith.constant dense<0.000000e+00> : vector<256xf32>
    %77 = vector.multi_reduction <add>, %76, %cst_21 [0] : vector<4x256xf32> to vector<256xf32>
    %78 = vector.shape_cast %77 : vector<256xf32> to vector<1x256xf32>
    %79 = math.log %78 : vector<1x256xf32>
    %80 = arith.mulf %76, %75 : vector<4x256xf32>
    %cst_22 = arith.constant dense<0.000000e+00> : vector<256xf32>
    %81 = vector.multi_reduction <add>, %80, %cst_22 [0] : vector<4x256xf32> to vector<256xf32>
    %82 = vector.shape_cast %81 : vector<256xf32> to vector<1x256xf32>
    %83 = arith.divf %82, %78 : vector<1x256xf32>
    %84 = arith.subf %79, %83 : vector<1x256xf32>
    %cst_23 = arith.constant 2.500000e-01 : f32
    %85 = vector.broadcast %cst_23 : f32 to vector<1x256xf32>
    %86 = arith.mulf %84, %85 : vector<1x256xf32>
    %87 = arith.subf %70, %86 : vector<1x256xf32>
    %88 = math.absf %87 : vector<1x256xf32>
    %cst_24 = arith.constant 4.82858515 : f32
    %89 = vector.broadcast %cst_24 : f32 to vector<1x256xf32>
    %90 = arith.mulf %88, %89 : vector<1x256xf32>
    %c0_25 = arith.constant 0 : index
    %c0_26 = arith.constant 0 : index
    %c0_27 = arith.constant 0 : index
    %91 = vector.load %arg7[%c0_25, %c0_26, %c0_27] : memref<1x1x256xf32, #tpu.memory_space<vmem>>, vector<1x1x256xf32>
    %92 = vector.shape_cast %91 : vector<1x1x256xf32> to vector<1x256xf32>
    %93 = vector.shape_cast %90 : vector<1x256xf32> to vector<1x1x256xf32>
    tpu.vector_store %arg7[%c0_25, %c0_26, %c0_27], %93 {strides = array<i32>} : memref<1x1x256xf32, #tpu.memory_space<vmem>>, vector<1x1x256xf32>,
    %94 = arith.addf %32, %54 : vector<4x256xf32>
    %cst_28 = arith.constant dense<0xFF800000> : vector<256xf32>
    %95 = vector.multi_reduction <maximumf>, %94, %cst_28 [0] : vector<4x256xf32> to vector<256xf32>
    %96 = vector.shape_cast %95 : vector<256xf32> to vector<1x256xf32>
    %97 = vector.broadcast %96 : vector<1x256xf32> to vector<4x256xf32>
    %98 = arith.subf %94, %97 : vector<4x256xf32>
    %99 = math.exp %98 : vector<4x256xf32>
    %cst_29 = arith.constant dense<0.000000e+00> : vector<256xf32>
    %100 = vector.multi_reduction <add>, %99, %cst_29 [0] : vector<4x256xf32> to vector<256xf32>
    %101 = vector.shape_cast %100 : vector<256xf32> to vector<1x256xf32>
    %102 = math.log %101 : vector<1x256xf32>
    %103 = arith.mulf %99, %98 : vector<4x256xf32>
    %cst_30 = arith.constant dense<0.000000e+00> : vector<256xf32>
    %104 = vector.multi_reduction <add>, %103, %cst_30 [0] : vector<4x256xf32> to vector<256xf32>
    %105 = vector.shape_cast %104 : vector<256xf32> to vector<1x256xf32>
    %106 = arith.divf %105, %101 : vector<1x256xf32>
    %107 = arith.subf %102, %106 : vector<1x256xf32>
    %cst_31 = arith.constant 2.500000e-01 : f32
    %108 = vector.broadcast %cst_31 : f32 to vector<1x256xf32>
    %109 = arith.mulf %107, %108 : vector<1x256xf32>
    %110 = arith.subf %32, %54 : vector<4x256xf32>
    %cst_32 = arith.constant dense<0xFF800000> : vector<256xf32>
    %111 = vector.multi_reduction <maximumf>, %110, %cst_32 [0] : vector<4x256xf32> to vector<256xf32>
    %112 = vector.shape_cast %111 : vector<256xf32> to vector<1x256xf32>
    %113 = vector.broadcast %112 : vector<1x256xf32> to vector<4x256xf32>
    %114 = arith.subf %110, %113 : vector<4x256xf32>
    %115 = math.exp %114 : vector<4x256xf32>
    %cst_33 = arith.constant dense<0.000000e+00> : vector<256xf32>
    %116 = vector.multi_reduction <add>, %115, %cst_33 [0] : vector<4x256xf32> to vector<256xf32>
    %117 = vector.shape_cast %116 : vector<256xf32> to vector<1x256xf32>
    %118 = math.log %117 : vector<1x256xf32>
    %119 = arith.mulf %115, %114 : vector<4x256xf32>
    %cst_34 = arith.constant dense<0.000000e+00> : vector<256xf32>
    %120 = vector.multi_reduction <add>, %119, %cst_34 [0] : vector<4x256xf32> to vector<256xf32>
    %121 = vector.shape_cast %120 : vector<256xf32> to vector<1x256xf32>
    %122 = arith.divf %121, %117 : vector<1x256xf32>
    %123 = arith.subf %118, %122 : vector<1x256xf32>
    %cst_35 = arith.constant 2.500000e-01 : f32
    %124 = vector.broadcast %cst_35 : f32 to vector<1x256xf32>
    %125 = arith.mulf %123, %124 : vector<1x256xf32>
    %126 = arith.subf %109, %125 : vector<1x256xf32>
    %127 = math.absf %126 : vector<1x256xf32>
    %cst_36 = arith.constant 4.82858515 : f32
    %128 = vector.broadcast %cst_36 : f32 to vector<1x256xf32>
    %129 = arith.mulf %127, %128 : vector<1x256xf32>
    %c0_37 = arith.constant 0 : index
    %c0_38 = arith.constant 0 : index
    %c0_39 = arith.constant 0 : index
    %130 = vector.load %arg6[%c0_37, %c0_38, %c0_39] : memref<1x1x256xf32, #tpu.memory_space<vmem>>, vector<1x1x256xf32>
    %131 = vector.shape_cast %130 : vector<1x1x256xf32> to vector<1x256xf32>
    %132 = vector.shape_cast %129 : vector<1x256xf32> to vector<1x1x256xf32>
    tpu.vector_store %arg6[%c0_37, %c0_38, %c0_39], %132 {strides = array<i32>} : memref<1x1x256xf32, #tpu.memory_space<vmem>>, vector<1x1x256xf32>,
    %c0_40 = arith.constant 0 : index
    %c0_41 = arith.constant 0 : index
    %c0_42 = arith.constant 0 : index
    %133 = vector.load %arg5[%c0_40, %c0_41, %c0_42] : memref<1x4x256xf32, #tpu.memory_space<vmem>>, vector<1x4x256xf32>
    %134 = vector.shape_cast %133 : vector<1x4x256xf32> to vector<4x256xf32>
    %135 = vector.shape_cast %32 : vector<4x256xf32> to vector<1x4x256xf32>
    tpu.vector_store %arg5[%c0_40, %c0_41, %c0_42], %135 {strides = array<i32>} : memref<1x4x256xf32, #tpu.memory_space<vmem>>, vector<1x4x256xf32>,
    return
  }
  func.func @transform_0(%arg0: i32, %arg1: i32) -> (i32, i32, i32) {
    %c0_i32 = arith.constant 0 : i32
    %c0_i32_0 = arith.constant 0 : i32
    return %arg0, %c0_i32, %arg1 : i32, i32, i32
  }
  func.func @transform_1(%arg0: i32, %arg1: i32) -> (i32, i32) {
    %c0_i32 = arith.constant 0 : i32
    %c0_i32_0 = arith.constant 0 : i32
    %c0_i32_1 = arith.constant 0 : i32
    return %c0_i32, %c0_i32_0 : i32, i32
  }
  func.func @transform_2(%arg0: i32, %arg1: i32) -> (i32, i32) {
    %c0_i32 = arith.constant 0 : i32
    %c0_i32_0 = arith.constant 0 : i32
    %c0_i32_1 = arith.constant 0 : i32
    return %c0_i32, %c0_i32_0 : i32, i32
  }
  func.func @transform_3(%arg0: i32, %arg1: i32) -> (i32, i32, i32) {
    %c0_i32 = arith.constant 0 : i32
    %c0_i32_0 = arith.constant 0 : i32
    return %arg0, %c0_i32, %arg1 : i32, i32, i32
  }
  func.func @transform_4(%arg0: i32, %arg1: i32) -> (i32, i32, i32) {
    %c0_i32 = arith.constant 0 : i32
    %c0_i32_0 = arith.constant 0 : i32
    return %arg0, %c0_i32, %arg1 : i32, i32, i32
  }
  func.func @transform_5(%arg0: i32, %arg1: i32) -> (i32, i32, i32) {
    %c0_i32 = arith.constant 0 : i32
    %c0_i32_0 = arith.constant 0 : i32
    return %arg0, %c0_i32, %arg1 : i32, i32, i32
  }
  func.func @transform_6(%arg0: i32, %arg1: i32) -> (i32, i32, i32) {
    %c0_i32 = arith.constant 0 : i32
    %c0_i32_0 = arith.constant 0 : i32
    return %arg0, %c0_i32, %arg1 : i32, i32, i32
  }
  func.func @transform_7(%arg0: i32, %arg1: i32) -> (i32, i32, i32) {
    %c0_i32 = arith.constant 0 : i32
    %c0_i32_0 = arith.constant 0 : i32
    return %arg0, %c0_i32, %arg1 : i32, i32, i32
  }
}

</mosaic_0001>

<bundles_post_ra>
// kernel: tpu_custom_call.1
= control target key start
LH: loop header
LB: loop body
LE: loop exit
PB: predicated region body
PF: predicated region fallthrough
CT: control target
= control target key end

     0   :  { %13 = vsyncpa [#allocation3], 0  ;;  %s1954_s0 = inlined_call_operand.vmem [shape: bf16[2,4,256], index: 0, kind: input, shape index: {}]   ;;  %s1955_s1 = inlined_call_operand.vmem [shape: bf16[32,4], index: 1, kind: input, shape index: {}]   ;;  %s1956_s2 = inlined_call_operand.vmem [shape: f32[32,1], index: 2, kind: input, shape index: {}]   ;;  %s1957_s3 = inlined_call_operand.hbm [shape: f32[2,4,256], index: 3, kind: output, shape index: {0}]   ;;  %s1958_s4 = inlined_call_operand.hbm [shape: f32[2,1,256], index: 4, kind: output, shape index: {1}]   ;;  %s1959_s5 = inlined_call_operand.hbm [shape: f32[2,1,256], index: 5, kind: output, shape index: {2}]   ;;  %s1960_s6 = inlined_call_operand.hbm [shape: f32[2,16,256], index: 6, kind: output, shape index: {3}]   ;;  %s1961_s7 = inlined_call_operand.vmem [shape: f32[2,12,256], index: 7, kind: output, shape index: {4}]  }
   0x1   :  { %15 = vsyncpa [#allocation3 + $0x1], 0 }
   0x2   :  { %16 = vsyncpa [#allocation5], 0 }
   0x3   :  { %18 = vsyncpa [#allocation5 + $0x1], 0 }
   0x4   :  { %19 = vsyncpa [#allocation8], 0 }
   0x5   :  { %21 = vsyncpa [#allocation8 + $0x1], 0  ;;  %s1613_s24 = smov 0   ;;  %s1615_s25 = smov 0  }
   0x6   :  { %s1617_s26 = smov 0   ;;  %s1619_s27 = smov 0  }
   0x7   :  { %s1621_s28 = smov 0   ;;  %s1623_s29 = smov 0  }
   0x8 LB: > { %s1963_s30 = sadd.s32 4294967295, %s1563_s29   ;;  %s1962_s8 = sadd.s32 4294967294, %s1563_s29   ;;  %s1563_s29 = sphi %s1623_s29, %s27_s29   ;;  %s1559_s28 = sphi %s1621_s28, %s1981_s28   ;;  %s1555_s27 = sphi %s1619_s27, %s1980_s27   ;;  %s1551_s26 = sphi %s1617_s26, %s1979_s26   ;;  %s1547_s25 = sphi %s1615_s25, %s1978_s25   ;;  %s1543_s24 = sphi %s1613_s24, %s1977_s24  }
   0x9   : > { %s39_s9 = sadd.s32 1, %s1559_s28  ;;  %s118_s10 = sadd.s32 1, %s1551_s26 }
   0xa   : > { %p41_p0 = scmp.ge.s32.totalorder %s39_s9, 2  ;;  %p128_p1 = scmp.ne.s32.totalorder %s1551_s26, %s1547_s25 }
   0xb   : > { %p129_p2 = scmp.eq.s32.totalorder %s1963_s30, 1  ;;  %p134_p3 = scmp.ne.s32.totalorder %s1547_s25, %s1543_s24 }
   0xc   : > { %s1983_s9 = smov (%p41_p0, %s39_s9), 0  ;;  %p135_p5 = scmp.eq.s32.totalorder %s1962_s8, 1 }
   0xd   : > { %p1655_p4 = por %p129_p2, %p128_p1  ;;  %s113_s12 = ssub.s32 %s1559_s28, %s1983_s9 }
   0xe   : > { %p1226_p6 = scmp.ge.s32.totalorder %s1563_s29, 1  ;;  %p116_p7 = scmp.eq.s32.totalorder %s113_s12, 0 }
   0xf   : > { %p1664_p8 = por %p135_p5, %p134_p3  ;;  %p284_p9 = scmp.lt.s32.totalorder %s1563_s29, 3 }
  0x10   : > { %s1670_s14 = scalar_select %p116_p7, %s1551_s26, %s118_s10  }
  0x11   : > { %p285_p10 = pnand %p1226_p6, %p284_p9 }
  0x12   : > { %p345_p11 = scmp.lt.s32.totalorder (!%p285_p10), %s1555_s27, 1 }
  0x13   : > { %288 = sbr.rel (%p285_p10) target bundleno = 429 (0x1ad), region = 32 }
  0x18   : > { %v1565_v0 = vmov 0   ;;  %s1674_s15 = scalar_select %p345_p11, %s1555_s27, 1  ;;  %v376_v1 = vld [vmem:[%s1956_s2 + $0x10] sm:$0xff]  ;;  %v374_v2 = vld [vmem:[%s1956_s2] sm:$0xff]  ;;  %vm424_vm0 = vcmask 1041408   ;;  %v377_v3 = vld [vmem:[%s1956_s2 + $0x18] sm:$0xff] }
  0x19   : > { %463 = vmatprep.mubr.bf16.mxu0 %v1565_v0  ;;  %473 = vmatprep.mubr.bf16.mxu1 %v1565_v0  ;;  %v375_v4 = vld [vmem:[%s1956_s2 + $0x8] sm:$0xff]  ;;  %v1339_v8 = vld [vmem:[%s1955_s1] sm:$0xff]   ;;  %vm417_vm1 = vcmask 31744  }
  0x1a   : > { %1337 = vset.pattern.permute.xlu0 %v1565_v0  ;;  %1338 = vset.pattern.permute.xlu1 %v1565_v0  ;;  %s1255_s20 = sshll.u32 %s1674_s15, 2  ;;  %v1340_v9 = vld [vmem:[%s1955_s1 + $0x8] sm:$0xff]  }
  0x1b   : > { %390 = vperm.xlu0 %1337, %v376_v1   ;;  %380 = vperm.xlu1 %1338, %v374_v2   ;;  %s352_s17 = scalar_lea.vmem %s1954_s0, %s1255_s20  ;;  %s1256_s20 = sshll.u32 %s1674_s15, 5 }
  0x1c   : > { %v1237_v5 = vld.sshfl [vmem:[%s352_s17] sm:$0x33 pattern:$0x76325410]  ;;  %s1702_s12 = scalar_lea.vmem %s1961_s7, %s1256_s20  ;;  %s1707_s15 = sand.u32 1, %s1547_s25  }
  0x1d   : > { %v416_v6 = vcombine.high %v1237_v5, %v1237_v5  ;;  %v426_v7 = vsel %vm424_vm0, %v1237_v5, 0  ;;  %s1227_s16 = sshll.u32 %s1707_s15, 3  ;;  %s1257_s17 = sshll.u32 %s1555_s27, 7 }
  0x1e   : > { %s311_s18 = scalar_lea.vmem [#allocation2], %s1227_s16  ;;  %s1727_s23 = scalar_lea.hbm %s1957_s3, %s1257_s17 }
  0x1f   : > { %395 = vperm.xlu0 %1337, %v377_v3   ;;  %385 = vperm.xlu1 %1338, %v375_v4   ;;  %s953_s19 = sshll.u32 %s311_s18, 4  ;;  %s913_s10 = scalar_lea.sflag [#allocation3], %s1707_s15  ;;  %s1729_s19 = int_to_ptr.vmem [resolvable:$true] %s953_s19 }
  0x20   : > { %1238 = vmatprep.subr.msk.bf16.mxu0 %vm424_vm0, %v416_v6  ;;  %1261 = vmatprep.subr.msk.bf16.mxu1 %vm424_vm0, %v416_v6  ;;  %s1566_s16 = smov [#allocation2]  }
  0x21   : > { %446 = vmatpush1.bf16.msra.mxu0 %v426_v7  ;;  %1262 = vmatpush1.bf16.msra.mxu1 %v426_v7  ;;  %s1405_s17 = sshll.u32 %s1566_s16, 4  ;;  %s1406_s17 = int_to_ptr.vmem [resolvable:$false] %s1405_s17 }
  0x22   : > { %s1407_s22 = scalar_lea.vmem %s1406_s17, 256  ;;  %p1408_p1 = scmp.lt.s32.totalorder %s1729_s19, %s1406_s17 }
  0x24   : > { %1239 = vmatmul.mubr.msk.bf16.vlgmr.msra.gmra.mxu0 %vm417_vm1, %v1339_v8  ;;  %1240 = vmatmul.mubr.msk.bf16.vlgmr.msra.gmra.mxu1 %vm417_vm1, %v1340_v9 }
  0x96   : > { %v381_v10 = vpop.permute.xlu1 %380  ;;  %v391_v11 = vpop.permute.xlu0 %390 }
  0x9a   : > { %v386_v22 = vpop.permute.xlu1 %385  ;;  %v396_v26 = vpop.permute.xlu0 %395 }
  0xe4   : > { %v465_v12 = vpop.f32.mrf.mxu0  ;;  %v475_v13 = vpop.f32.mrf.mxu1 }
  0xe5   : > { %v466_v14 = vadd.f32 %v465_v12, %v381_v10  ;;  %v476_v15 = vadd.f32 %v475_v13, %v391_v11 }
  0xe6   : > { %v467_v16 = vpop.f32.mrf.mxu0  ;;  %v477_v17 = vpop.f32.mrf.mxu1 }
  0xe7   : > { %496 = vst [vmem:[%s1702_s12] sm:$0xff] %v466_v14  ;;  %v502_v18 = vrot.slane %v466_v14, 4  ;;  %v484_v19 = vmul.f32 1.442695, %v476_v15  ;;  %v468_v20 = vadd.f32 %v467_v16, %v381_v10  ;;  %v478_v21 = vadd.f32 %v477_v17, %v391_v11 }
  0xe8   : > { %v469_v23 = vpop.f32.mrf.mxu0  ;;  %v479_v24 = vpop.f32.mrf.mxu1 }
  0xe9   : > { %v506_v25 = vadd.f32 %v502_v18, %v466_v14  ;;  %1341 = vpow2.f32 %v484_v19  ;;  %497 = vst [vmem:[%s1702_s12 + $0x8] sm:$0xff] %v468_v20  ;;  %v503_v27 = vrot.slane %v468_v20, 4  ;;  %v486_v28 = vmul.f32 1.442695, %v478_v21 }
  0xea   : > { %v470_v29 = vadd.f32 %v469_v23, %v386_v22  ;;  %v480_v30 = vadd.f32 %v479_v24, %v396_v26  ;;  %v471_v31 = vpop.f32.mrf.mxu0  ;;  %v481_v32 = vpop.f32.mrf.mxu1 }
  0xeb   : > { %v507_v33 = vadd.f32 %v503_v27, %v468_v20  ;;  %1343 = vpow2.f32 %v486_v28  ;;  %v472_v34 = vadd.f32 %v471_v31, %v386_v22  ;;  %v482_v35 = vadd.f32 %v481_v32, %v396_v26 }
  0xec   : > { %498 = vst [vmem:[%s1702_s12 + $0x10] sm:$0xf] %v470_v29  ;;  %v516_v36 = vadd.f32 %v506_v25, %v470_v29  ;;  %v522_v37 = vrot.slane %v470_v29, 4  ;;  %v488_v38 = vmul.f32 1.442695, %v480_v30 }
  0xed   : > { %499 = vst [vmem:[%s1702_s12 + $0x18] sm:$0xf] %v472_v34  ;;  %v517_v39 = vadd.f32 %v507_v33, %v472_v34  ;;  %v523_v40 = vrot.slane %v472_v34, 4  ;;  %v490_v41 = vmul.f32 1.442695, %v482_v35  ;;  %s1401_s12 = scalar_lea.vmem %s1729_s19, 128 }
  0xee   : > { %v526_v42 = vadd.f32 %v522_v37, %v516_v36  ;;  %1345 = vpow2.f32 %v488_v38  ;;  %p1402_p12 = scmp.ne.s32.totalorder %s1729_s19, %s1401_s12  ;;  %p1409_p2 = scmp.lt.s32.totalorder %s1407_s22, %s1401_s12 }
  0xef   : > { %v527_v43 = vadd.f32 %v523_v40, %v517_v39  ;;  %1347 = vpow2.f32 %v490_v41 }
  0xf0   : > { %v1712_v44 = vmul.f32 0.25, %v526_v42  ;;  %p1403_p13 = pnand %p1402_p12, %p1655_p4  ;;  %p1410_p3 = por %p1409_p2, %p1408_p1 }
  0xf1   : > { %v1715_v45 = vmul.f32 0.25, %v527_v43 }
  0xf2   : > { %v554_v46 = vsub.f32 %v466_v14, %v1712_v44  ;;  %v562_v47 = vrot.slane %v1712_v44, 4  ;;  %v578_v52 = vsub.f32 %v470_v29, %v1712_v44  ;;  %p1404_p0 = pneg %p1403_p13 }
  0xf3   : > { %v555_v48 = vsub.f32 %v468_v20, %v1715_v45  ;;  %v563_v49 = vrot.slane %v1715_v45, 4  ;;  %v909_v50 = vcombine.low %v1712_v44, %v1715_v45  ;;  %v579_v55 = vsub.f32 %v472_v34, %v1715_v45 }
  0xf4   : > { %v566_v51 = vsub.f32 %v466_v14, %v562_v47  ;;  %v584_v53 = vsub.f32 %v470_v29, %v562_v47  ;;  %v556_v58 = vmul.f32 %v554_v46, %v554_v46  ;;  %p1411_p5 = pnand %p1410_p3, %p1404_p0 }
  0xf5   : > { %v567_v54 = vsub.f32 %v468_v20, %v563_v49  ;;  %v585_v56 = vsub.f32 %v472_v34, %v563_v49  ;;  %911 = vst [vmem:[%s311_s18] sm:$0xff] %v909_v50 }
  0xf6   : > { %v1342_v57 = vpop.eup %1341  ;;  %v568_v59 = vmul.f32 %v566_v51, %v566_v51  ;;  %v586_v60 = vmul.f32 %v584_v53, %v584_v53 }
  0xf7   : > { %1414 = shalt.err (!%p1411_p5)
}
  0xf8   : > { %s1415_s18 = scalar_lea.hbm %s1727_s23, 128  ;;  %s1419_s16 = scalar_lea.hbm %s1957_s3, 256 }
  0xf9   : > { %p1416_p6 = scmp.ne.s32.totalorder %s1727_s23, %s1415_s18  ;;  %p1420_p10 = scmp.lt.s32.totalorder %s1727_s23, %s1957_s3 }
  0xfa   : > { %p1421_p11 = scmp.lt.s32.totalorder %s1419_s16, %s1415_s18 }
  0xfb   : > { %p1417_p7 = pnand %p1416_p6, %p1655_p4 }
  0xfc   : > { %p1422_p12 = por %p1421_p11, %p1420_p10 }
  0xfd   : > { %p1418_p9 = pneg %p1417_p7 }
  0xff   : > { %p1423_p13 = pnand %p1422_p12, %p1418_p9 }
 0x101   : > { %1426 = shalt.err (!%p1423_p13)
}
 0x102   : > { %1263 = dma.vmem_to_hbm [thread:$0]  (%p1655_p4), %s1729_s19, 128, %s1727_s23, %s913_s10   ;;  %v510_v61 = vrot.slane %v1342_v57, 4  ;;  %v557_v62 = vmul.f32 %v555_v48, %v555_v48  ;;  %v569_v63 = vmul.f32 %v567_v54, %v567_v54  ;;  %v587_v0 = vmul.f32 %v585_v56, %v585_v56  ;;  %v1344_v1 = vpop.eup %1343 }
 0x103   : > { %s1968_s8 = sshll.u32 %s1707_s15, 5  ;;  %v572_v2 = vrot.slane %v568_v59, 4  ;;  %v580_v3 = vmul.f32 %v578_v52, %v578_v52  ;;  %v511_v5 = vrot.slane %v1344_v1, 4  ;;  %v581_v7 = vmul.f32 %v579_v55, %v579_v55  ;;  %v1346_v10 = vpop.eup %1345  ;;  %s1260_s30 = sshll.u32 %s1555_s27, 9 }
 0x104   : > { %s332_s12 = scalar_lea.vmem [#allocation7], %s1968_s8  ;;  %v514_v4 = vadd.f32 %v1342_v57, %v510_v61  ;;  %v573_v6 = vrot.slane %v569_v63, 4  ;;  %v590_v9 = vrot.slane %v586_v60, 4  ;;  %v591_v13 = vrot.slane %v587_v0, 4  ;;  %v1348_v14 = vpop.eup %1347  ;;  %s1760_s23 = scalar_lea.hbm %s1960_s6, %s1260_s30 }
 0x105   : > { %492 = vst [vmem:[%s332_s12] sm:$0xff] %v1342_v57  ;;  %493 = vst [vmem:[%s332_s12 + $0x8] sm:$0xff] %v1344_v1  ;;  %v576_v8 = vadd.f32 %v572_v2, %v556_v58  ;;  %v515_v11 = vadd.f32 %v1344_v1, %v511_v5  ;;  %v530_v17 = vrot.slane %v1346_v10, 4  ;;  %s1000_s10 = sshll.u32 %s332_s12, 4  ;;  %v531_v20 = vrot.slane %v1348_v14, 4  ;;  %s928_s17 = scalar_lea.sflag [#allocation8], %s1707_s15  ;;  %s1762_s10 = int_to_ptr.vmem [resolvable:$true] %s1000_s10 }
 0x106   : > { %v577_v12 = vadd.f32 %v573_v6, %v557_v62  ;;  %v518_v16 = vadd.f32 %v1346_v10, %v514_v4  ;;  %494 = vst [vmem:[%s332_s12 + $0x10] sm:$0xff] %v1346_v10  ;;  %495 = vst [vmem:[%s332_s12 + $0x18] sm:$0xff] %v1348_v14  ;;  %s1427_s22 = scalar_lea.vmem %s1762_s10, 512  ;;  %s1567_s18 = smov [#allocation7]  }
 0x107   : > { %v582_v15 = vadd.f32 %v580_v3, %v576_v8  ;;  %v519_v19 = vadd.f32 %v1348_v14, %v515_v11  ;;  %p1428_p0 = scmp.ne.s32.totalorder %s1762_s10, %s1427_s22  ;;  %s1431_s20 = sshll.u32 %s1567_s18, 4  ;;  %s1432_s20 = int_to_ptr.vmem [resolvable:$false] %s1431_s20 }
 0x108   : > { %v583_v18 = vadd.f32 %v581_v7, %v577_v12  ;;  %v534_v22 = vadd.f32 %v530_v17, %v518_v16  ;;  %s1433_s16 = scalar_lea.vmem %s1432_s20, 1024  ;;  %p1434_p3 = scmp.lt.s32.totalorder %s1762_s10, %s1432_s20 }
 0x109   : > { %v594_v21 = vadd.f32 %v590_v9, %v582_v15  ;;  %v535_v24 = vadd.f32 %v531_v20, %v519_v19  ;;  %p1429_p1 = pnand %p1428_p0, %p1655_p4  ;;  %p1435_p5 = scmp.lt.s32.totalorder %s1433_s16, %s1427_s22 }
 0x10a   : > { %v595_v23 = vadd.f32 %v591_v13, %v583_v18 }
 0x10b   : > { %p1430_p2 = pneg %p1429_p1  ;;  %p1436_p6 = por %p1435_p5, %p1434_p3 }
 0x10d   : > { %p1437_p7 = pnand %p1436_p6, %p1430_p2 }
 0x10f   : > { %1440 = shalt.err (!%p1437_p7)
}
 0x110   : > { %s1441_s8 = scalar_lea.hbm %s1760_s23, 512  ;;  %s1445_s19 = scalar_lea.hbm %s1960_s6, 1024 }
 0x111   : > { %p1442_p9 = scmp.ne.s32.totalorder %s1760_s23, %s1441_s8  ;;  %p1446_p12 = scmp.lt.s32.totalorder %s1760_s23, %s1960_s6 }
 0x112   : > { %p1447_p13 = scmp.lt.s32.totalorder %s1445_s19, %s1441_s8 }
 0x113   : > { %p1443_p10 = pnand %p1442_p9, %p1655_p4 }
 0x114   : > { %p1448_p0 = por %p1447_p13, %p1446_p12 }
 0x115   : > { %p1444_p11 = pneg %p1443_p10 }
 0x117   : > { %p1449_p1 = pnand %p1448_p0, %p1444_p11 }
 0x119   : > { %1452 = shalt.err (!%p1449_p1)
}
 0x11a   : > { %s1568_s22 = smov 256   ;;  %s1569_s20 = smov 16   ;;  %v596_v25 = vmul.f32 0.33333334, %v594_v21  ;;  %v538_v26 = vmul.f32 0.25, %v534_v22  ;;  %vm600_vm2 = vcmask 1043456  }
 0x11b   : > { %1266 = dma.vmem_to_hbm [thread:$0]  (%p1655_p4), %s1762_s10, 512, %s1760_s23, %s928_s17, %s1568_s22, %s1568_s22, %s1569_s20   ;;  %v597_v27 = vmul.f32 0.33333334, %v595_v23  ;;  %v539_v28 = vmul.f32 0.25, %v535_v24 }
 0x11c   : > { %v756_v29 = vadd.f32 %v596_v25, %v1712_v44  ;;  %v820_v30 = vsub.f32 %v1712_v44, %v596_v25  ;;  %1349 = vrsqrt.f32 %v538_v26  ;;  %vm542_vm3 = vcmp.eq.f32.partialorder %v538_v26, inf  ;;  %s1965_s23 = sshll.u32 %s1707_s15, 1  ;;  %s1969_s10 = sadd.s32 4294967295, %s1563_s29  }
 0x11d   : > { %v757_v31 = vadd.f32 %v597_v27, %v1715_v45  ;;  %v821_v32 = vsub.f32 %v1715_v45, %v597_v27  ;;  %1351 = vrsqrt.f32 %v539_v28  ;;  %vm544_vm4 = vcmp.eq.f32.partialorder %v538_v26, 0.0  ;;  %s1856_s17 = sand.u32 1, %s1969_s10   ;;  %s1964_s16 = sshll.u32 %s1555_s27, 5 }
 0x11e   : > { %v758_v33 = vsel %vm600_vm2, %v756_v29, -inf  ;;  %v822_v34 = vsel %vm600_vm2, %v820_v30, -inf  ;;  %v545_v62 = vand.u32 2147483648, %v538_v26  ;;  %vm549_vm5 = vcmp.eq.f32.partialorder %v539_v28, inf  ;;  %s318_s8 = scalar_lea.vmem [#allocation4], %s1965_s23  ;;  %s1875_s21 = scalar_lea.hbm %s1958_s4, %s1964_s16 }
 0x11f   : > { %v759_v35 = vrot.slane %v758_v33, 4  ;;  %v823_v36 = vrot.slane %v822_v34, 4  ;;  %v765_v37 = vsel %vm600_vm2, %v757_v31, -inf  ;;  %v829_v38 = vsel %vm600_vm2, %v821_v32, -inf  ;;  %s969_s12 = sshll.u32 %s318_s8, 4  ;;  %s1571_s20 = smov [#allocation4]   ;;  %s1877_s12 = int_to_ptr.vmem [resolvable:$true] %s969_s12 }
 0x120   : > { %v766_v39 = vrot.slane %v765_v37, 4  ;;  %v830_v40 = vrot.slane %v829_v38, 4  ;;  %vm551_vm6 = vcmp.eq.f32.partialorder %v539_v28, 0.0  ;;  %v552_v9 = vand.u32 2147483648, %v539_v28  ;;  %s1453_s22 = scalar_lea.vmem %s1877_s12, 32  ;;  %s1457_s10 = sshll.u32 %s1571_s20, 4  ;;  %s1458_s10 = int_to_ptr.vmem [resolvable:$false] %s1457_s10 }
 0x121   : > { %v760_v41 = vmax.f32 %v758_v33, %v759_v35  ;;  %v824_v42 = vmax.f32 %v822_v34, %v823_v36  ;;  %p1454_p2 = scmp.ne.s32.totalorder %s1877_s12, %s1453_s22  ;;  %s1459_s30 = scalar_lea.vmem %s1458_s10, 64 }
 0x122   : > { %v767_v43 = vmax.f32 %v765_v37, %v766_v39  ;;  %v831_v46 = vmax.f32 %v829_v38, %v830_v40  ;;  %p1460_p6 = scmp.lt.s32.totalorder %s1877_s12, %s1458_s10  ;;  %p1461_p7 = scmp.lt.s32.totalorder %s1459_s30, %s1453_s22 }
 0x123   : > { %v761_v47 = vrot.slane %v760_v41, 2  ;;  %v825_v48 = vrot.slane %v824_v42, 2  ;;  %p1455_p3 = pnand %p1454_p2, %p1655_p4 }
 0x124   : > { %v768_v49 = vrot.slane %v767_v43, 2  ;;  %v832_v50 = vrot.slane %v831_v46, 2  ;;  %p1462_p9 = por %p1461_p7, %p1460_p6 }
 0x125   : > { %v762_v51 = vmax.f32 %v760_v41, %v761_v47  ;;  %v826_v52 = vmax.f32 %v824_v42, %v825_v48  ;;  %p1456_p5 = pneg %p1455_p3 }
 0x126   : > { %v769_v53 = vmax.f32 %v767_v43, %v768_v49  ;;  %v833_v54 = vmax.f32 %v831_v46, %v832_v50 }
 0x127   : > { %v763_v55 = vrot.slane %v762_v51, 1  ;;  %v827_v56 = vrot.slane %v826_v52, 1  ;;  %p1463_p10 = pnand %p1462_p9, %p1456_p5 }
 0x128   : > { %v770_v57 = vrot.slane %v769_v53, 1  ;;  %v834_v58 = vrot.slane %v833_v54, 1 }
 0x129   : > { %v1350_v59 = vpop.eup %1349  ;;  %v764_v60 = vmax.f32 %v762_v51, %v763_v55  ;;  %v828_v61 = vmax.f32 %v826_v52, %v827_v56 }
 0x12a   : > { %v1352_v63 = vpop.eup %1351  ;;  %v771_v0 = vmax.f32 %v769_v53, %v770_v57  ;;  %v835_v1 = vmax.f32 %v833_v54, %v834_v58  ;;  %v541_v2 = vmul.f32 %v1350_v59, %v538_v26 }
 0x12b   : > { %v772_v3 = vsub.f32 %v756_v29, %v764_v60  ;;  %v836_v4 = vsub.f32 %v820_v30, %v828_v61  ;;  %v548_v5 = vmul.f32 %v1352_v63, %v539_v28 }
 0x12c   : > { %v773_v6 = vsub.f32 %v757_v31, %v771_v0  ;;  %v837_v7 = vsub.f32 %v821_v32, %v835_v1  ;;  %v543_v8 = vsel %vm542_vm3, %v538_v26, %v541_v2 }
 0x12d   : > { %v774_v10 = vmul.f32 1.442695, %v772_v3  ;;  %v838_v11 = vmul.f32 1.442695, %v836_v4  ;;  %v546_v12 = vsel %vm544_vm4, %v545_v62, %v543_v8  ;;  %v550_v13 = vsel %vm549_vm5, %v539_v28, %v548_v5 }
 0x12e   : > { %v776_v14 = vmul.f32 1.442695, %v773_v6  ;;  %v840_v15 = vmul.f32 1.442695, %v837_v7  ;;  %v553_v16 = vsel %vm551_vm6, %v552_v9, %v550_v13  ;;  %v1798_v17 = vadd.f32 %v546_v12, %v1712_v44 }
 0x12f   : > { %1353 = vpow2.f32 %v774_v10  ;;  %v1801_v18 = vadd.f32 %v553_v16, %v1715_v45  ;;  %v1804_v19 = vsub.f32 %v1712_v44, %v546_v12  ;;  %v1807_v20 = vsub.f32 %v1715_v45, %v553_v16 }
 0x130   : > { %1355 = vpow2.f32 %v838_v11  ;;  %v601_v21 = vsel %vm600_vm2, %v1798_v17, -inf }
 0x131   : > { %1357 = vpow2.f32 %v776_v14  ;;  %v602_v22 = vrot.slane %v601_v21, 4  ;;  %v608_v23 = vsel %vm600_vm2, %v1801_v18, -inf  ;;  %v665_v24 = vsel %vm600_vm2, %v1804_v19, -inf }
 0x132   : > { %1359 = vpow2.f32 %v840_v15  ;;  %v609_v25 = vrot.slane %v608_v23, 4  ;;  %v666_v26 = vrot.slane %v665_v24, 4  ;;  %v672_v44 = vsel %vm600_vm2, %v1807_v20, -inf }
 0x133   : > { %v603_v45 = vmax.f32 %v601_v21, %v602_v22  ;;  %v673_v28 = vrot.slane %v672_v44, 4 }
 0x134   : > { %v610_v27 = vmax.f32 %v608_v23, %v609_v25  ;;  %v667_v29 = vmax.f32 %v665_v24, %v666_v26 }
 0x135   : > { %v604_v30 = vrot.slane %v603_v45, 2  ;;  %v674_v32 = vmax.f32 %v672_v44, %v673_v28 }
 0x136   : > { %v611_v31 = vrot.slane %v610_v27, 2  ;;  %v668_v33 = vrot.slane %v667_v29, 2 }
 0x137   : > { %v605_v35 = vmax.f32 %v603_v45, %v604_v30  ;;  %v675_v40 = vrot.slane %v674_v32, 2 }
 0x138   : > { %v612_v39 = vmax.f32 %v610_v27, %v611_v31  ;;  %v669_v46 = vmax.f32 %v667_v29, %v668_v33 }
 0x139   : > { %v606_v54 = vrot.slane %v605_v35, 1  ;;  %v676_v58 = vmax.f32 %v674_v32, %v675_v40 }
 0x13a   : > { %v613_v57 = vrot.slane %v612_v39, 1  ;;  %v670_v62 = vrot.slane %v669_v46, 1 }
 0x13b   : > { %v677_v11 = vrot.slane %v676_v58, 1 }
 0x13c   : > { %v1354_v34 = vpop.eup %1353  ;;  %v614_v14 = vmax.f32 %v612_v39, %v613_v57  ;;  %v671_v26 = vmax.f32 %v669_v46, %v670_v62 }
 0x13d   : > { %v1356_v36 = vpop.eup %1355  ;;  %v796_v37 = vmul.f32 %v1354_v34, %v772_v3  ;;  %v778_v38 = vsel %vm600_vm2, %v1354_v34, 0.0  ;;  %v678_v31 = vmax.f32 %v676_v58, %v677_v11 }
 0x13e   : > { %v1358_v41 = vpop.eup %1357  ;;  %v779_v42 = vrot.slane %v778_v38, 4  ;;  %v842_v43 = vsel %vm600_vm2, %v1356_v36, 0.0  ;;  %v860_v52 = vmul.f32 %v1356_v36, %v836_v4  ;;  %v1829_v30 = vsub.f32 %v1801_v18, %v614_v14 }
 0x13f   : > { %v1360_v47 = vpop.eup %1359  ;;  %v797_v48 = vmul.f32 %v1358_v41, %v773_v6  ;;  %v785_v49 = vsel %vm600_vm2, %v1358_v41, 0.0  ;;  %v843_v50 = vrot.slane %v842_v43, 4  ;;  %v798_v51 = vsel %vm600_vm2, %v796_v37, 0.0 }
 0x140   : > { %v780_v53 = vadd.f32 %v779_v42, %v778_v38  ;;  %v786_v55 = vrot.slane %v785_v49, 4  ;;  %v861_v60 = vmul.f32 %v1360_v47, %v837_v7  ;;  %v799_v63 = vrot.slane %v798_v51, 4 }
 0x141   : > { %v844_v56 = vadd.f32 %v843_v50, %v842_v43  ;;  %v805_v59 = vsel %vm600_vm2, %v797_v48, 0.0  ;;  %v849_v2 = vsel %vm600_vm2, %v1360_v47, 0.0  ;;  %v862_v3 = vsel %vm600_vm2, %v860_v52, 0.0 }
 0x142   : > { %v781_v61 = vrot.slane %v780_v53, 2  ;;  %v787_v0 = vadd.f32 %v786_v55, %v785_v49  ;;  %v850_v4 = vrot.slane %v849_v2, 4  ;;  %v607_v6 = vmax.f32 %v605_v35, %v606_v54 }
 0x143   : > { %v845_v1 = vrot.slane %v844_v56, 2  ;;  %v806_v8 = vrot.slane %v805_v59, 4  ;;  %v869_v12 = vsel %vm600_vm2, %v861_v60, 0.0  ;;  %v863_v15 = vrot.slane %v862_v3, 4 }
 0x144   : > { %v782_v5 = vadd.f32 %v781_v61, %v780_v53  ;;  %v788_v9 = vrot.slane %v787_v0, 2  ;;  %v851_v7 = vadd.f32 %v850_v4, %v849_v2  ;;  %v800_v21 = vadd.f32 %v799_v63, %v798_v51 }
 0x145   : > { %v846_v10 = vadd.f32 %v845_v1, %v844_v56  ;;  %v1826_v25 = vsub.f32 %v1798_v17, %v607_v6  ;;  %v870_v44 = vrot.slane %v869_v12, 4  ;;  %v807_v27 = vadd.f32 %v806_v8, %v805_v59 }
 0x146   : > { %v783_v13 = vrot.slane %v782_v5, 1  ;;  %v789_v16 = vadd.f32 %v788_v9, %v787_v0  ;;  %v852_v24 = vrot.slane %v851_v7, 2  ;;  %v801_v33 = vrot.slane %v800_v21, 2 }
 0x147   : > { %v847_v22 = vrot.slane %v846_v10, 1  ;;  %v864_v34 = vadd.f32 %v863_v15, %v862_v3  ;;  %v808_v17 = vrot.slane %v807_v27, 2  ;;  %v871_v36 = vadd.f32 %v870_v44, %v869_v12 }
 0x148   : > { %v784_v23 = vadd.f32 %v783_v13, %v782_v5  ;;  %v790_v45 = vrot.slane %v789_v16, 1  ;;  %v853_v29 = vadd.f32 %v852_v24, %v851_v7  ;;  %v617_v37 = vmul.f32 1.442695, %v1826_v25 }
 0x149   : > { %v848_v28 = vadd.f32 %v847_v22, %v846_v10  ;;  %v1833_v39 = vsub.f32 %v1804_v19, %v671_v26  ;;  %v1836_v18 = vsub.f32 %v1807_v20, %v678_v31  ;;  %v802_v40 = vadd.f32 %v801_v33, %v800_v21 }
 0x14a   : > { %1361 = vlog2.f32 %v784_v23  ;;  %v791_v32 = vadd.f32 %v790_v45, %v789_v16  ;;  %v854_v35 = vrot.slane %v853_v29, 1  ;;  %v865_v41 = vrot.slane %v864_v34, 2 }
 0x14b   : > { %1363 = vrcp.f32 %v784_v23  ;;  %v619_v42 = vmul.f32 1.442695, %v1829_v30  ;;  %v681_v43 = vmul.f32 1.442695, %v1833_v39  ;;  %v872_v46 = vrot.slane %v871_v36, 2 }
 0x14c   : > { %1365 = vlog2.f32 %v848_v28  ;;  %v855_v38 = vadd.f32 %v854_v35, %v853_v29  ;;  %v683_v47 = vmul.f32 1.442695, %v1836_v18  ;;  %v809_v48 = vadd.f32 %v808_v17, %v807_v27 }
 0x14d   : > { %1367 = vlog2.f32 %v791_v32  ;;  %v803_v49 = vrot.slane %v802_v40, 1  ;;  %v866_v19 = vadd.f32 %v865_v41, %v864_v34  ;;  %v873_v20 = vadd.f32 %v872_v46, %v871_v36 }
 0x14e   : > { %1369 = vrcp.f32 %v791_v32  ;;  %v810_v50 = vrot.slane %v809_v48, 1  ;;  %v739_v3 = vlaneseq  ;;  %v1570_v10 = vmov 1966171168  }
 0x14f   : > { %1371 = vrcp.f32 %v848_v28  ;;  %v804_v52 = vadd.f32 %v803_v49, %v802_v40  ;;  %v867_v53 = vrot.slane %v866_v19, 1  ;;  %v874_v58 = vrot.slane %v873_v20, 1 }
 0x150   : > { %1373 = vlog2.f32 %v855_v38  ;;  %v811_v60 = vadd.f32 %v810_v50, %v809_v48  ;;  %v737_v11 = vunpack.c.l.s4 %v1570_v10  ;;  %v740_v22 = vshrl.u32 %v739_v3, 7 }
 0x151   : > { %1375 = vrcp.f32 %v855_v38  ;;  %v868_v1 = vadd.f32 %v867_v53, %v866_v19  ;;  %v875_v6 = vadd.f32 %v874_v58, %v873_v20  ;;  %vm1863_vm7 = vcmp.lt.s32.totalorder %v739_v3, 256 }
 0x152   : > { %1377 = vpow2.f32 %v617_v37  ;;  %v738_v32 = vunpack.c.0.s8 %v737_v11 }
 0x153   : > { %1379 = vpow2.f32 %v619_v42 }
 0x154   : > { %1381 = vpow2.f32 %v681_v43  ;;  %v1850_v20 = vsub.s32 %v738_v32, %v740_v22 }
 0x155   : > { %1383 = vpow2.f32 %v683_v47 }
 0x157   : > { %v1362_v51 = vpop.eup %1361 }
 0x158   : > { %v1364_v54 = vpop.eup %1363  ;;  %v793_v55 = vmul.f32 0.6931472, %v1362_v51 }
 0x159   : > { %v1366_v56 = vpop.eup %1365  ;;  %v813_v57 = vmul.f32 %v1364_v54, %v804_v52 }
 0x15a   : > { %v1368_v59 = vpop.eup %1367  ;;  %v857_v0 = vmul.f32 0.6931472, %v1366_v56 }
 0x15b   : > { %v1370_v61 = vpop.eup %1369  ;;  %v795_v62 = vmul.f32 0.6931472, %v1368_v59  ;;  %v816_v63 = vsub.f32 %v793_v55, %v813_v57 }
 0x15c   : > { %v1372_v2 = vpop.eup %1371  ;;  %v815_v5 = vmul.f32 %v1370_v61, %v811_v60 }
 0x15d   : > { %v1374_v4 = vpop.eup %1373  ;;  %v877_v8 = vmul.f32 %v1372_v2, %v868_v1  ;;  %v818_v14 = vmul.f32 0.25, %v816_v63 }
 0x15e   : > { %v1376_v9 = vpop.eup %1375  ;;  %v817_v12 = vsub.f32 %v795_v62, %v815_v5  ;;  %v859_v13 = vmul.f32 0.6931472, %v1374_v4 }
 0x15f   : > { %v1378_v7 = vpop.eup %1377  ;;  %v879_v15 = vmul.f32 %v1376_v9, %v875_v6  ;;  %v880_v16 = vsub.f32 %v857_v0, %v877_v8 }
 0x160   : > { %v1380_v21 = vpop.eup %1379  ;;  %v819_v23 = vmul.f32 0.25, %v817_v12  ;;  %v621_v24 = vsel %vm600_vm2, %v1378_v7, 0.0  ;;  %v639_v26 = vmul.f32 %v1378_v7, %v1826_v25 }
 0x161   : > { %v1382_v44 = vpop.eup %1381  ;;  %v881_v45 = vsub.f32 %v859_v13, %v879_v15  ;;  %v882_v27 = vmul.f32 0.25, %v880_v16  ;;  %v622_v28 = vrot.slane %v621_v24, 4  ;;  %v628_v29 = vsel %vm600_vm2, %v1380_v21, 0.0 }
 0x162   : > { %v1384_v31 = vpop.eup %1383  ;;  %v629_v33 = vrot.slane %v628_v29, 4  ;;  %v640_v34 = vmul.f32 %v1380_v21, %v1829_v30  ;;  %v685_v35 = vsel %vm600_vm2, %v1382_v44, 0.0  ;;  %v641_v38 = vsel %vm600_vm2, %v639_v26, 0.0 }
 0x163   : > { %v883_v17 = vmul.f32 0.25, %v881_v45  ;;  %v884_v36 = vsub.f32 %v818_v14, %v882_v27  ;;  %v623_v37 = vadd.f32 %v622_v28, %v621_v24  ;;  %v686_v40 = vrot.slane %v685_v35, 4 }
 0x164   : > { %v630_v25 = vadd.f32 %v629_v33, %v628_v29  ;;  %v692_v41 = vsel %vm600_vm2, %v1384_v31, 0.0  ;;  %v648_v47 = vsel %vm600_vm2, %v640_v34, 0.0  ;;  %v642_v49 = vrot.slane %v641_v38, 4 }
 0x165   : > { %v885_v42 = vsub.f32 %v819_v23, %v883_v17  ;;  %v886_v43 = vand.u32 2147483647, %v884_v36  ;;  %v624_v46 = vrot.slane %v623_v37, 2  ;;  %v687_v30 = vadd.f32 %v686_v40, %v685_v35 }
 0x166   : > { %v631_v48 = vrot.slane %v630_v25, 2  ;;  %v693_v19 = vrot.slane %v692_v41, 4  ;;  %v649_v53 = vrot.slane %v648_v47, 4  ;;  %v703_v59 = vmul.f32 %v1382_v44, %v1833_v39 }
 0x167   : > { %v887_v50 = vand.u32 2147483647, %v885_v42  ;;  %v625_v51 = vadd.f32 %v624_v46, %v623_v37  ;;  %v688_v54 = vrot.slane %v687_v30, 2  ;;  %v888_v56 = vmul.f32 4.828585, %v886_v43 }
 0x168   : > { %v632_v52 = vadd.f32 %v631_v48, %v630_v25  ;;  %v694_v55 = vadd.f32 %v693_v19, %v692_v41  ;;  %v643_v61 = vadd.f32 %v642_v49, %v641_v38  ;;  %v704_v2 = vmul.f32 %v1384_v31, %v1836_v18 }
 0x169   : > { %v889_v57 = vmul.f32 4.828585, %v887_v50  ;;  %v626_v58 = vrot.slane %v625_v51, 1  ;;  %v689_v62 = vadd.f32 %v688_v54, %v687_v30  ;;  %v650_v4 = vadd.f32 %v649_v53, %v648_v47 }
 0x16a   : > { %v633_v60 = vrot.slane %v632_v52, 1  ;;  %v695_v63 = vrot.slane %v694_v55, 2  ;;  %v705_v10 = vsel %vm600_vm2, %v703_v59, 0.0  ;;  %v644_v18 = vrot.slane %v643_v61, 2 }
 0x16b   : > { %v892_v0 = vcombine.low %v888_v56, %v889_v57  ;;  %v627_v1 = vadd.f32 %v626_v58, %v625_v51  ;;  %v690_v6 = vrot.slane %v689_v62, 1  ;;  %v706_v3 = vrot.slane %v705_v10, 4 }
 0x16c   : > { %v634_v5 = vadd.f32 %v633_v60, %v632_v52  ;;  %v696_v39 = vadd.f32 %v695_v63, %v694_v55  ;;  %v712_v7 = vsel %vm600_vm2, %v704_v2, 0.0  ;;  %v651_v14 = vrot.slane %v650_v4, 2 }
 0x16d   : > { %v899_v9 = vrot.slane %v892_v0, %v1850_v20  ;;  %1385 = vlog2.f32 %v627_v1  ;;  %v691_v11 = vadd.f32 %v690_v6, %v689_v62  ;;  %v713_v16 = vrot.slane %v712_v7, 4 }
 0x16e   : > { %1387 = vlog2.f32 %v634_v5  ;;  %v697_v12 = vrot.slane %v696_v39, 1  ;;  %v707_v21 = vadd.f32 %v706_v3, %v705_v10 }
 0x16f   : > { %v906_v13 = vrot.slane %v899_v9, %v1850_v20  ;;  %1389 = vrcp.f32 %v627_v1 }
 0x170   : > { %1391 = vrcp.f32 %v634_v5  ;;  %v698_v15 = vadd.f32 %v697_v12, %v696_v39 }
 0x171   : > { %908 = vst.msk [vmem:[%s318_s8] sm:$0x3] %vm1863_vm7, %v906_v13  ;;  %1393 = vlog2.f32 %v691_v11 }
 0x172   : > { %1466 = shalt.err (!%p1463_p10)
}
 0x173   : > { %s1467_s8 = scalar_lea.hbm %s1875_s21, 32  ;;  %s1471_s20 = scalar_lea.hbm %s1958_s4, 64 }
 0x174   : > { %p1468_p11 = scmp.ne.s32.totalorder %s1875_s21, %s1467_s8  ;;  %p1472_p0 = scmp.lt.s32.totalorder %s1875_s21, %s1958_s4 }
 0x175   : > { %p1473_p1 = scmp.lt.s32.totalorder %s1471_s20, %s1467_s8 }
 0x176   : > { %p1469_p12 = pnand %p1468_p11, %p1655_p4 }
 0x177   : > { %p1474_p2 = por %p1473_p1, %p1472_p0 }
 0x178   : > { %p1470_p13 = pneg %p1469_p12 }
 0x17a   : > { %p1475_p3 = pnand %p1474_p2, %p1470_p13 }
 0x17c   : > { %1478 = shalt.err (!%p1475_p3)
}
 0x17d   : > { %s1972_s22 = scalar_lea.sflag [#allocation5], %s1856_s17  ;;  %1395 = vlog2.f32 %v698_v15  ;;  %v714_v22 = vadd.f32 %v713_v16, %v712_v7  ;;  %v645_v23 = vadd.f32 %v644_v18, %v643_v61  ;;  %v708_v24 = vrot.slane %v707_v21, 2  ;;  %v1386_v31 = vpop.eup %1385  ;;  %s1973_s23 = sshll.u32 %s1707_s15, 1 }
 0x17e   : > { %1264 = dma.vmem_to_hbm [thread:$0]  (%p1655_p4), %s1877_s12, 32, %s1875_s21, %s1972_s22   ;;  %1397 = vrcp.f32 %v691_v11  ;;  %v652_v26 = vadd.f32 %v651_v14, %v650_v4  ;;  %v1388_v32 = vpop.eup %1387  ;;  %v636_v33 = vmul.f32 0.6931472, %v1386_v31 }
 0x17f   : > { %v715_v44 = vrot.slane %v714_v22, 2  ;;  %1399 = vrcp.f32 %v698_v15  ;;  %v646_v45 = vrot.slane %v645_v23, 1  ;;  %v709_v27 = vadd.f32 %v708_v24, %v707_v21  ;;  %v1390_v17 = vpop.eup %1389  ;;  %s325_s16 = scalar_lea.vmem [#allocation6], %s1973_s23  ;;  %s1974_s21 = sshll.u32 %s1555_s27, 5 }
 0x180   : > { %v653_v28 = vrot.slane %v652_v26, 1  ;;  %v638_v36 = vmul.f32 0.6931472, %v1388_v32  ;;  %v1392_v25 = vpop.eup %1391  ;;  %s985_s12 = sshll.u32 %s325_s16, 4  ;;  %s983_s30 = scalar_lea.hbm %s1959_s5, %s1974_s21  ;;  %s986_s12 = int_to_ptr.vmem [resolvable:$true] %s985_s12 }
 0x181   : > { %v716_v29 = vadd.f32 %v715_v44, %v714_v22  ;;  %v647_v34 = vadd.f32 %v646_v45, %v645_v23  ;;  %v710_v35 = vrot.slane %v709_v27, 1  ;;  %v1394_v41 = vpop.eup %1393  ;;  %s1479_s8 = scalar_lea.vmem %s986_s12, 32  ;;  %s1572_s15 = smov [#allocation6]  }
 0x182   : > { %v654_v37 = vadd.f32 %v653_v28, %v652_v26  ;;  %v700_v47 = vmul.f32 0.6931472, %v1394_v41  ;;  %p1480_p5 = scmp.ne.s32.totalorder %s986_s12, %s1479_s8  ;;  %s1483_s19 = sshll.u32 %s1572_s15, 4  ;;  %s1484_s19 = int_to_ptr.vmem [resolvable:$false] %s1483_s19 }
 0x183   : > { %v717_v38 = vrot.slane %v716_v29, 1  ;;  %v656_v40 = vmul.f32 %v1390_v17, %v647_v34  ;;  %v711_v48 = vadd.f32 %v710_v35, %v709_v27  ;;  %s1485_s20 = scalar_lea.vmem %s1484_s19, 64  ;;  %p1486_p9 = scmp.lt.s32.totalorder %s986_s12, %s1484_s19 }
 0x184   : > { %v658_v42 = vmul.f32 %v1392_v25, %v654_v37  ;;  %p1481_p6 = pnand %p1480_p5, %p1655_p4  ;;  %p1487_p10 = scmp.lt.s32.totalorder %s1485_s20, %s1479_s8 }
 0x185   : > { %v659_v46 = vsub.f32 %v636_v33, %v656_v40  ;;  %v718_v50 = vadd.f32 %v717_v38, %v716_v29 }
 0x186   : > { %v660_v30 = vsub.f32 %v638_v36, %v658_v42  ;;  %p1482_p7 = pneg %p1481_p6  ;;  %p1488_p11 = por %p1487_p10, %p1486_p9 }
 0x187   : > { %v661_v54 = vmul.f32 0.25, %v659_v46 }
 0x188   : > { %v662_v56 = vmul.f32 0.25, %v660_v30  ;;  %p1489_p12 = pnand %p1488_p11, %p1482_p7 }
 0x18a   : > { %v1396_v43 = vpop.eup %1395 }
 0x18b   : > { %v1398_v49 = vpop.eup %1397  ;;  %v702_v19 = vmul.f32 0.6931472, %v1396_v43 }
 0x18c   : > { %v1400_v51 = vpop.eup %1399  ;;  %v720_v52 = vmul.f32 %v1398_v49, %v711_v48 }
 0x18d   : > { %v722_v53 = vmul.f32 %v1400_v51, %v718_v50 }
 0x18e   : > { %v723_v55 = vsub.f32 %v700_v47, %v720_v52 }
 0x18f   : > { %v724_v57 = vsub.f32 %v702_v19, %v722_v53 }
 0x190   : > { %v725_v58 = vmul.f32 0.25, %v723_v55 }
 0x191   : > { %v726_v59 = vmul.f32 0.25, %v724_v57 }
 0x192   : > { %v727_v60 = vsub.f32 %v661_v54, %v725_v58 }
 0x193   : > { %v728_v61 = vsub.f32 %v662_v56, %v726_v59 }
 0x194   : > { %v729_v62 = vand.u32 2147483647, %v727_v60 }
 0x195   : > { %v730_v63 = vand.u32 2147483647, %v728_v61 }
 0x196   : > { %v731_v0 = vmul.f32 4.828585, %v729_v62 }
 0x197   : > { %v732_v1 = vmul.f32 4.828585, %v730_v63 }
 0x199   : > { %v735_v2 = vcombine.low %v731_v0, %v732_v1 }
 0x19b   : > { %v742_v5 = vrot.slane %v735_v2, %v1850_v20 }
 0x19d   : > { %v749_v4 = vrot.slane %v742_v5, %v1850_v20 }
 0x19f   : > { %755 = vst.msk [vmem:[%s325_s16] sm:$0x3] %vm1863_vm7, %v749_v4 }
 0x1a0   : > { %1492 = shalt.err (!%p1489_p12)
}
 0x1a1   : > { %s1493_s27 = scalar_lea.hbm %s983_s30, 32  ;;  %s1497_s16 = scalar_lea.hbm %s1959_s5, 64 }
 0x1a2   : > { %p1494_p13 = scmp.ne.s32.totalorder %s983_s30, %s1493_s27  ;;  %p1498_p2 = scmp.lt.s32.totalorder %s983_s30, %s1959_s5 }
 0x1a3   : > { %p1499_p3 = scmp.lt.s32.totalorder %s1497_s16, %s1493_s27 }
 0x1a4   : > { %p1495_p0 = pnand %p1494_p13, %p1655_p4 }
 0x1a5   : > { %p1500_p5 = por %p1499_p3, %p1498_p2 }
 0x1a6   : > { %p1496_p1 = pneg %p1495_p0 }
 0x1a8   : > { %p1501_p6 = pnand %p1500_p5, %p1496_p1 }
 0x1aa   : > { %1504 = shalt.err (!%p1501_p6)
}
 0x1ab   : > { %s1975_s10 = scalar_lea.sflag [#allocation5], %s1856_s17 }
 0x1ac   : > { %1265 = dma.vmem_to_hbm [thread:$0]  (%p1655_p4), %s986_s12, 32, %s983_s30, %s1975_s10  }
 0x1ad PF: > { %p1284_p7 = scmp.ge.s32.totalorder %s1563_s29, 2  ;;  %s1019_s8 = sand.u32 1, %s1543_s24  }
 0x1ae   : > { %s1020_s15 = scalar_lea.sflag [#allocation3], %s1019_s8 }
 0x1af   : > { %p1272_p9 = pnand %p1284_p7, %p1664_p8 }
 0x1b1   : > { %p1273_p10 = pneg %p1272_p9 }
 0x1b3   : > { %1530 = dma.done.wait (%p1273_p10), %s1020_s15, 128  }
 0x1b4   : > { %1532 = vsyncadd (%p1273_p10), %s1020_s15, 4294967168  ;;  %s1976_s19 = sadd.s32 4294967294, %s1563_s29  }
 0x1b5   : > { %s1028_s20 = sand.u32 1, %s1976_s19  }
 0x1b6   : > { %s1029_s27 = scalar_lea.sflag [#allocation5], %s1028_s20 }
 0x1b7   : > { %1534 = dma.done.wait (%p1273_p10), %s1029_s27, 64  }
 0x1b8   : > { %1536 = vsyncadd (%p1273_p10), %s1029_s27, 4294967232  ;;  %s1047_s11 = scalar_lea.sflag [#allocation8], %s1019_s8 }
 0x1b9   : > { %1538 = dma.done.wait (%p1273_p10), %s1047_s11, 512  }
 0x1ba   : > { %1540 = vsyncadd (%p1273_p10), %s1047_s11, 4294966784  ;;  %s27_s29 = sadd.s32 1, %s1563_s29   ;;  %s1977_s24 = smov %s1547_s25 }
 0x1bb   : > { %p24_p4 = scmp.ge.s32.totalorder %s27_s29, 4   ;;  %s1978_s25 = smov %s1551_s26 }
 0x1bc   : > { %s1979_s26 = smov %s1670_s14  ;;  %s1980_s27 = smov %s1559_s28 }
 0x1bd   : > { %s1981_s28 = smov %s1983_s9  ;;  %26 = sbr.rel (!%p24_p4) target bundleno = 8 (0x8), region = 128 }
 0x1c2   :  { %1064 = vsyncpa [#allocation3], 1 }
 0x1c3   :  { %1066 = vsyncpa [#allocation3 + $0x1], 1 }
 0x1c4   :  { %1067 = vsyncpa [#allocation5], 1 }
 0x1c5   :  { %1069 = vsyncpa [#allocation5 + $0x1], 1 }
 0x1c6   :  { %1070 = vsyncpa [#allocation8], 1 }
 0x1c7   :  { %1072 = vsyncpa [#allocation8 + $0x1], 1 }

</bundles_post_ra>
